<compile_context>
chip_gen: v7x
topology: tpu7x:2x2x1
jax: 0.10.0
libtpu: 0.0.40
codegen_flags: <defaults>
</compile_context>

<pallas_src>
import jax
import jax.numpy as jnp
from jax.experimental import pallas as pl
from jax.experimental.pallas import tpu as pltpu


def _round_up(x, m):
    return ((x + m - 1) // m) * m


def _cdiv(a, b):
    return (a + b - 1) // b


def _srm_kernel(x_ref, p_ref, o_ref):
    # x_ref: (TR, HW) in the I/O dtype.  p_ref: (TR, 3) f32 = [a, b, c] with
    #   z_hat = mean * a + std * b + c   (cfc weights, eval-BN folded in).
    x = x_ref[...].astype(jnp.float32)
    hw = x.shape[-1]
    denom = max(hw - 1, 1)          # unbiased variance (ddof=1); guard hw == 1

    # --- style pooling: single-pass mean / unbiased variance in f32 ---
    s1 = jnp.sum(x, axis=-1, keepdims=True)               # (TR, 1)
    s2 = jnp.sum(x * x, axis=-1, keepdims=True)           # (TR, 1)
    mean = s1 * (1.0 / hw)
    var = (s2 - hw * mean * mean) * (1.0 / denom)
    var = jnp.maximum(var, 0.0)     # clamp catastrophic cancellation -> no NaN
    std = jnp.sqrt(var + 1e-5)

    # --- style integration + folded eval-mode BatchNorm + sigmoid gate ---
    p = p_ref[...]
    z_hat = mean * p[:, 0:1] + std * p[:, 1:2] + p[:, 2:3]
    g = jax.nn.sigmoid(z_hat)                              # (TR, 1) f32

    # --- recalibration: reuse the already-cast x, store in the I/O dtype ---
    o_ref[...] = (x * g).astype(o_ref.dtype)


def srm_layer(x, cfc, bn_weight, bn_bias, bn_running_mean, bn_running_var,
              bn_eps=1e-5, row_tile=None):
    N, C, H, W = x.shape
    hw = H * W
    nc = N * C
    dtype = x.dtype
    dtype_bytes = jnp.dtype(dtype).itemsize

    # HBM I/O stays in the input dtype (this op is HBM-bandwidth bound).
    x2d = x.reshape(nc, hw)
    # TODO(synk): when H*W is not a multiple of 128 (e.g. 7x7, 14x14), the
    # (tr, hw) layout stores through masked vst; a lane-dense regroup of rows
    # (k rows per 128-aligned slab + segmented per-row reductions) would
    # recover the wasted lanes for small feature maps.

    # Fold eval-mode BatchNorm into the cfc weights:
    #   z_hat = (mean*cfc0 + std*cfc1 - rm) * w / sqrt(rv + eps) + b
    #         = mean*a + std*b_ + c
    # TODO(synk): training-mode BatchNorm (batch statistics over N) not implemented.
    inv = (bn_weight.astype(jnp.float32)
           / jnp.sqrt(bn_running_var.astype(jnp.float32) + bn_eps))
    a = cfc[:, 0].astype(jnp.float32) * inv
    b = cfc[:, 1].astype(jnp.float32) * inv
    c = bn_bias.astype(jnp.float32) - bn_running_mean.astype(jnp.float32) * inv

    # Per-row params: row r corresponds to (n, ch) = (r // C, r % C).
    params = jnp.stack([jnp.tile(a, N), jnp.tile(b, N), jnp.tile(c, N)], axis=-1)

    # --- row-tile size ---
    if row_tile is None:
        # ~2 MiB per I/O block, bounded by a conservative total VMEM
        # working-set budget that is safe on all generations (v7x: 64 MiB/TC).
        vmem_budget = 40 * 1024 * 1024
        # per row: in+out double-buffered blocks + in-kernel f32 temporaries.
        bytes_per_row = 4 * hw * dtype_bytes + 8 * hw + 32
        tr = (2 * 1024 * 1024) // (hw * dtype_bytes)
        tr = min(tr, vmem_budget // bytes_per_row)
        # Prefer >= 4 (else >= 2) grid steps so "parallel" rows split across
        # the two v7x TensorCores, but never shrink a block below ~512 KiB,
        # where the fixed ~0.35us per-step overhead dominates on v5e/v6e.
        min_block_rows = _round_up(max(8, (512 * 1024) // (hw * dtype_bytes)), 8)
        for steps in (4, 2):
            cand = _round_up(_cdiv(nc, steps), 8)
            if cand >= min_block_rows:
                tr = min(tr, cand)
                break
        tr = min(tr, _round_up(nc, 8))
        tr = max(8, (tr // 8) * 8)
    else:
        tr = max(8, (int(row_tile) // 8) * 8)

    grid_steps = _cdiv(nc, tr)

    # Only the tiny parameter table is padded; the big tensor's tail block is
    # left ragged (Pallas clips reads / masks writes for the tail rows).
    nc_pad = grid_steps * tr
    if nc_pad != nc:
        params = jnp.pad(params, ((0, nc_pad - nc), (0, 0)))

    row_spec = pl.BlockSpec((tr, hw), lambda r: (r, 0))
    par_spec = pl.BlockSpec((tr, 3), lambda r: (r, 0))

    cost = pl.CostEstimate(
        flops=6 * nc * hw,
        transcendentals=2 * nc,                      # sqrt + sigmoid per row
        bytes_accessed=2 * nc * hw * dtype_bytes + nc_pad * 3 * 4,
    )

    out2d = pl.pallas_call(
        _srm_kernel,
        out_shape=jax.ShapeDtypeStruct((nc, hw), dtype),
        grid_spec=pltpu.PrefetchScalarGridSpec(
            num_scalar_prefetch=0,
            grid=(grid_steps,),
            in_specs=[row_spec, par_spec],
            out_specs=row_spec,
        ),
        compiler_params=pltpu.CompilerParams(
            dimension_semantics=("parallel",),
            vmem_limit_bytes=48 * 1024 * 1024,
        ),
        cost_estimate=cost,
    )(x2d, params)

    return out2d.reshape(N, C, H, W)


def srm_reference(x, cfc, bn_weight, bn_bias, bn_rm, bn_rv, bn_eps=1e-5):
    """Pure-JAX reference mirroring the PyTorch forward (eval-mode BN)."""
    N, C, H, W = x.shape
    xf = x.reshape(N, C, -1).astype(jnp.float32)
    mean = xf.mean(axis=2)
    std = jnp.sqrt(xf.var(axis=2, ddof=1) + 1e-5)
    z = mean * cfc[None, :, 0] + std * cfc[None, :, 1]            # (N, C)
    z_hat = (z - bn_rm) / jnp.sqrt(bn_rv + bn_eps) * bn_weight + bn_bias
    g = jax.nn.sigmoid(z_hat)[:, :, None, None]
    return (x.astype(jnp.float32) * g).astype(x.dtype)


if __name__ == "__main__":
    key = jax.random.PRNGKey(0)

    def make_case(k, N, C, H, W):
        k1, k2, k3, k4 = jax.random.split(k, 4)
        x = jax.random.normal(k1, (N, C, H, W), dtype=jnp.float32)
        # PyTorch __init__ zero-fills cfc; use small deterministic nonzero
        # values so the test is nontrivial.
        cfc = 0.1 * jax.random.normal(k2, (C, 2), dtype=jnp.float32)
        w = 1.0 + 0.1 * jax.random.normal(k3, (C,), dtype=jnp.float32)
        b = 0.1 * jax.random.normal(k4, (C,), dtype=jnp.float32)
        rm = jnp.zeros((C,), jnp.float32)
        rv = jnp.ones((C,), jnp.float32)
        return x, cfc, w, b, rm, rv

    cases = [
        # (shape, forced row_tile) -- row_tile=None -> auto-sized
        ((2, 4, 16, 16), None),   # primary shape, hw = 256 (lane-dense)
        ((3, 5, 8, 16), 8),       # nc = 15, tr = 8 -> ragged tail block, 2 grid steps
        ((2, 3, 7, 7), None),     # hw = 49 (masked-lane path), nc = 6 < block rows
    ]
    keys = jax.random.split(key, len(cases))
    for (shape, rt), k in zip(cases, keys):
        x, cfc, w, b, rm, rv = make_case(k, *shape)
        out = jax.block_until_ready(srm_layer(x, cfc, w, b, rm, rv, row_tile=rt))
        ref = srm_reference(x, cfc, w, b, rm, rv)
        assert out.shape == x.shape, f"shape mismatch at {shape}"
        assert out.dtype == x.dtype, f"dtype mismatch at {shape}"
        assert jnp.allclose(out, ref, atol=1e-5, rtol=1e-5), f"value mismatch at {shape}"

    print("KERNEL_OK")
</pallas_src>

<mosaic_0001>
module attributes {stable_mosaic.version = 11 : i64} {
  func.func @_srm_kernel(%arg0: i32, %arg1: memref<8x256xf32, #tpu.memory_space<vmem>>, %arg2: memref<8x3xf32, #tpu.memory_space<vmem>>, %arg3: memref<8x256xf32, #tpu.memory_space<vmem>>) attributes {dimension_semantics = [#tpu.dimension_semantics<parallel>], iteration_bounds = array<i64: 1>, scalar_prefetch = 0 : i64, scratch_operands = 0 : i64, tpu.core_type = #tpu.core_type<tc>, window_params = [{transform_indices = @transform_0, window_bounds = array<i64: 8, 256>}, {transform_indices = @transform_1, window_bounds = array<i64: 8, 3>}, {transform_indices = @transform_2, window_bounds = array<i64: 8, 256>}]} {
    %c0 = arith.constant 0 : index
    %c0_0 = arith.constant 0 : index
    %0 = vector.load %arg1[%c0, %c0_0] : memref<8x256xf32, #tpu.memory_space<vmem>>, vector<8x256xf32>
    %cst = arith.constant dense<0.000000e+00> : vector<8xf32>
    %1 = vector.multi_reduction <add>, %0, %cst [1] : vector<8x256xf32> to vector<8xf32>
    %2 = vector.shape_cast %1 : vector<8xf32> to vector<8x1xf32>
    %3 = arith.mulf %0, %0 : vector<8x256xf32>
    %cst_1 = arith.constant dense<0.000000e+00> : vector<8xf32>
    %4 = vector.multi_reduction <add>, %3, %cst_1 [1] : vector<8x256xf32> to vector<8xf32>
    %5 = vector.shape_cast %4 : vector<8xf32> to vector<8x1xf32>
    %cst_2 = arith.constant 3.906250e-03 : f32
    %6 = vector.broadcast %cst_2 : f32 to vector<8x1xf32>
    %7 = arith.mulf %2, %6 : vector<8x1xf32>
    %cst_3 = arith.constant 2.560000e+02 : f32
    %8 = vector.broadcast %cst_3 : f32 to vector<8x1xf32>
    %9 = arith.mulf %8, %7 : vector<8x1xf32>
    %10 = arith.mulf %9, %7 : vector<8x1xf32>
    %11 = arith.subf %5, %10 : vector<8x1xf32>
    %cst_4 = arith.constant 0.00392156886 : f32
    %12 = vector.broadcast %cst_4 : f32 to vector<8x1xf32>
    %13 = arith.mulf %11, %12 : vector<8x1xf32>
    %cst_5 = arith.constant 0.000000e+00 : f32
    %14 = vector.broadcast %cst_5 : f32 to vector<8x1xf32>
    %15 = arith.maximumf %13, %14 : vector<8x1xf32>
    %cst_6 = arith.constant 9.99999974E-6 : f32
    %16 = vector.broadcast %cst_6 : f32 to vector<8x1xf32>
    %17 = arith.addf %15, %16 : vector<8x1xf32>
    %18 = math.sqrt %17 : vector<8x1xf32>
    %c0_7 = arith.constant 0 : index
    %c0_8 = arith.constant 0 : index
    %19 = vector.load %arg2[%c0_7, %c0_8] : memref<8x3xf32, #tpu.memory_space<vmem>>, vector<8x3xf32>
    %20 = vector.extract_strided_slice %19 {offsets = [0, 0], sizes = [8, 1], strides = [1, 1]} : vector<8x3xf32> to vector<8x1xf32>
    %21 = arith.mulf %7, %20 : vector<8x1xf32>
    %22 = vector.extract_strided_slice %19 {offsets = [0, 1], sizes = [8, 1], strides = [1, 1]} : vector<8x3xf32> to vector<8x1xf32>
    %23 = arith.mulf %18, %22 : vector<8x1xf32>
    %24 = arith.addf %21, %23 : vector<8x1xf32>
    %25 = vector.extract_strided_slice %19 {offsets = [0, 2], sizes = [8, 1], strides = [1, 1]} : vector<8x3xf32> to vector<8x1xf32>
    %26 = arith.addf %24, %25 : vector<8x1xf32>
    %27 = arith.negf %26 : vector<8x1xf32>
    %28 = math.exp %27 : vector<8x1xf32>
    %cst_9 = arith.constant 1.000000e+00 : f32
    %29 = vector.broadcast %cst_9 : f32 to vector<8x1xf32>
    %30 = arith.addf %29, %28 : vector<8x1xf32>
    %31 = arith.divf %29, %30 : vector<8x1xf32>
    %32 = vector.broadcast %31 : vector<8x1xf32> to vector<8x256xf32>
    %33 = arith.mulf %0, %32 : vector<8x256xf32>
    %c0_10 = arith.constant 0 : index
    %c0_11 = arith.constant 0 : index
    %34 = vector.load %arg3[%c0_10, %c0_11] : memref<8x256xf32, #tpu.memory_space<vmem>>, vector<8x256xf32>
    tpu.vector_store %arg3[%c0_10, %c0_11], %33 {strides = array<i32>} : memref<8x256xf32, #tpu.memory_space<vmem>>, vector<8x256xf32>,
    return
  }
  func.func @transform_0(%arg0: i32) -> (i32, i32) {
    %c0_i32 = arith.constant 0 : i32
    %c0_i32_0 = arith.constant 0 : i32
    return %arg0, %c0_i32 : i32, i32
  }
  func.func @transform_1(%arg0: i32) -> (i32, i32) {
    %c0_i32 = arith.constant 0 : i32
    %c0_i32_0 = arith.constant 0 : i32
    return %arg0, %c0_i32 : i32, i32
  }
  func.func @transform_2(%arg0: i32) -> (i32, i32) {
    %c0_i32 = arith.constant 0 : i32
    %c0_i32_0 = arith.constant 0 : i32
    return %arg0, %c0_i32 : i32, i32
  }
}

</mosaic_0001>

<bundles_post_ra>
// kernel: tpu_custom_call.1
= control target key start
LH: loop header
LB: loop body
LE: loop exit
PB: predicated region body
PF: predicated region fallthrough
CT: control target
= control target key end

     0   :  { %7 = vsyncpa [#allocation3], 0  ;;  %s199_s0 = inlined_call_operand.hbm [shape: f32[8,256], index: 0, kind: input, shape index: {}]   ;;  %s200_s1 = inlined_call_operand.vmem [shape: f32[8,3], index: 1, kind: input, shape index: {}]   ;;  %s201_s2 = inlined_call_operand.hbm [shape: f32[8,256], index: 2, kind: output, shape index: {}]  }
   0x1   :  { %8 = vsyncpa [#allocation4], 0  ;;  %s152_s9 = smov [#allocation2]   ;;  %s104_s13 = scalar_lea.hbm %s199_s0, 256 }
   0x2   :  { %s15_s10 = sshll.u32 %s152_s9, 4  ;;  %p105_p0 = scmp.ne.s32.totalorder %s199_s0, %s104_s13  ;;  %s16_s10 = int_to_ptr.vmem [resolvable:$true] %s15_s10 }
   0x3   :  { %p108_p1 = scmp.lt.u32.totalorder %s104_s13, %s199_s0 }
   0x5   :  { %p110_p2 = pnand %p108_p1, %p105_p0 }
   0x7   :  { %113 = shalt.err (!%p110_p2)
}
   0x8   :  { %s114_s18 = scalar_lea.vmem %s16_s10, 256  ;;  %p119_p4 = scmp.lt.s32.totalorder %s16_s10, %s16_s10 }
   0x9   :  { %p115_p3 = scmp.ne.s32.totalorder %s16_s10, %s114_s18  ;;  %p120_p5 = scmp.lt.s32.totalorder %s114_s18, %s114_s18 }
   0xb   :  { %p121_p6 = por %p120_p5, %p119_p4 }
   0xd   :  { %p122_p7 = pnand %p121_p6, %p115_p3 }
   0xf   :  { %125 = shalt.err (!%p122_p7)
}
  0x10   :  { %18 = dma.hbm_to_vmem [thread:$0]  %s199_s0, 256, %s16_s10, [#allocation3]  }
  0x11   :  { %148 = dma.done.wait [#allocation3], 256  }
  0x12   :  { %149 = vsyncadd [#allocation3], 4294967040  ;;  %v24_v0 = vld [vmem:[#allocation2] sm:$0xff]  ;;  %v25_v1 = vld [vmem:[#allocation2 + $0x8] sm:$0xff]  ;;  %s153_s0 = smov 127   ;;  %v155_v23 = vmov 0  }
  0x13   :  { %v26_v2 = vadd.f32 %v25_v1, %v24_v0  ;;  %v29_v3 = vmul.f32 %v24_v0, %v24_v0  ;;  %v30_v4 = vmul.f32 %v25_v1, %v25_v1  ;;  %v48_v7 = vld [vmem:[%s200_s1] sm:$0xff]  ;;  %s154_s1 = smov 126   ;;  %97 = vset.pattern.permute.xlu0 %v155_v23  ;;  %s156_s23 = smov [#allocation5]  }
  0x14   :  { %s82_s24 = sshll.u32 %s156_s23, 4  ;;  %s83_s24 = int_to_ptr.vmem [resolvable:$true] %s82_s24 }
  0x15   :  { %27 = vadd.xlane.f32.xlu0 %v26_v2  ;;  %v31_v5 = vadd.f32 %v30_v4, %v29_v3  ;;  %s126_s25 = scalar_lea.vmem %s83_s24, 256  ;;  %p131_p9 = scmp.lt.s32.totalorder %s83_s24, %s83_s24 }
  0x16   :  { %p127_p8 = scmp.ne.s32.totalorder %s83_s24, %s126_s25  ;;  %p132_p10 = scmp.lt.s32.totalorder %s126_s25, %s126_s25 }
  0x18   :  { %p133_p11 = por %p132_p10, %p131_p9 }
  0x19   :  { %32 = vadd.xlane.f32.xlu0 %v31_v5 }
  0x1a   :  { %p134_p12 = pnand %p133_p11, %p127_p8 }
  0xa2   :  { %v28_v6 = vpop.xlane.xlu0 %27 }
  0xa3   :  { %v34_v8 = vmul.f32 0.00390625, %v28_v6 }
  0xa5   :  { %v35_v9 = vmul.f32 256.0, %v34_v8  ;;  %v49_v10 = vmul.f32 %v48_v7, %v34_v8 }
  0xa6   :  { %v33_v11 = vpop.xlane.xlu0 %32 }
  0xa7   :  { %v36_v12 = vmul.f32 %v35_v9, %v34_v8 }
  0xa9   :  { %v37_v13 = vsub.f32 %v33_v11, %v36_v12 }
  0xab   :  { %v38_v14 = vmul.f32 0.003921569, %v37_v13 }
  0xad   :  { %v39_v15 = vmax.f32 %v38_v14, 0.0 }
  0xaf   :  { %v40_v16 = vadd.f32 1e-05, %v39_v15 }
  0xb1   :  { %98 = vrsqrt.f32 %v40_v16  ;;  %vm43_vm0 = vcmp.eq.f32.partialorder %v40_v16, inf  ;;  %v46_v19 = vand.u32 2147483648, %v40_v16  ;;  %vm45_vm1 = vcmp.eq.f32.partialorder %v40_v16, 0.0 }
  0xbb   :  { %v99_v17 = vpop.eup %98 }
  0xbc   :  { %v42_v18 = vmul.f32 %v99_v17, %v40_v16 }
  0xbe   :  { %v44_v20 = vsel %vm43_vm0, %v40_v16, %v42_v18 }
  0xbf   :  { %v47_v21 = vsel %vm45_vm1, %v46_v19, %v44_v20 }
  0xc0   :  { %v50_v22 = vmul.f32 %v48_v7, %v47_v21 }
  0xc2   :  { %52 = vrot.lane.b32.xlu1 %v50_v22, %s153_s0 }
  0xc6   :  { %57 = vrot.lane.b32.xlu1 %v48_v7, %s154_s1 }
 0x134   :  { %v53_v24 = vpop.permute.xlu1 %52 }
 0x135   :  { %v55_v25 = vadd.f32 %v53_v24, %v49_v10 }
 0x138   :  { %v58_v26 = vpop.permute.xlu1 %57 }
 0x139   :  { %v60_v27 = vadd.f32 %v58_v26, %v55_v25 }
 0x13b   :  { %v91_v28 = vmul.f32 -1.442695, %v60_v27 }
 0x13d   :  { %100 = vpow2.f32 %v91_v28 }
 0x147   :  { %v101_v29 = vpop.eup %100 }
 0x148   :  { %v64_v30 = vadd.f32 1.0, %v101_v29 }
 0x14a   :  { %102 = vrcp.f32 %v64_v30 }
 0x154   :  { %v103_v31 = vpop.eup %102 }
 0x155   :  { %69 = vperm.xlu0 %97, %v103_v31  }
 0x1d4   :  { %v70_v32 = vpop.permute.xlu0 %69 }
 0x1d5   :  { %v72_v33 = vmul.f32 %v70_v32, %v24_v0  ;;  %v73_v34 = vmul.f32 %v70_v32, %v25_v1 }
 0x1d7   :  { %74 = vst [vmem:[#allocation5] sm:$0xff] %v72_v33  ;;  %75 = vst [vmem:[#allocation5 + $0x8] sm:$0xff] %v73_v34 }
 0x1d8   :  { %137 = shalt.err (!%p134_p12)
}
 0x1d9   :  { %s138_s28 = scalar_lea.hbm %s201_s2, 256 }
 0x1da   :  { %p139_p13 = scmp.ne.s32.totalorder %s201_s2, %s138_s28  ;;  %p142_p0 = scmp.lt.u32.totalorder %s138_s28, %s201_s2 }
 0x1dc   :  { %p144_p1 = pnand %p142_p0, %p139_p13 }
 0x1de   :  { %147 = shalt.err (!%p144_p1)
}
 0x1df   :  { %85 = dma.vmem_to_hbm [thread:$0]  %s83_s24, 256, %s201_s2, [#allocation4]  }
 0x1e0   :  { %150 = dma.done.wait [#allocation4], 256  }
 0x1e1   :  { %151 = vsyncadd [#allocation4], 4294967040 }
 0x1e2   :  { %89 = vsyncpa [#allocation3], 1 }
 0x1e3   :  { %90 = vsyncpa [#allocation4], 1 }

</bundles_post_ra>
